<compile_context>
chip_gen: v6e
topology: v6e:2x2x1
jax: 0.10.0
libtpu: 0.0.40
codegen_flags: <defaults>
</compile_context>

<pallas_src>
import functools

import jax
import jax.numpy as jnp
from jax.experimental import pallas as pl
from jax.experimental.pallas import tpu as pltpu


def _round_up(x, m):
    return ((x + m - 1) // m) * m


def bahdanau_kernel(enc_ref, dec_ref, w1t_ref, w2t_ref, bv_ref, ctx_ref, attn_ref):
    """One tile of TB decoder states against the full (VMEM-resident) encoder.

    enc_ref  : (S, U)   encoder inputs (constant index_map -> resident)
    dec_ref  : (TB, U)  this tile's decoder hidden states
    w1t_ref  : (U, U)   W1^T (decoder projection), resident
    w2t_ref  : (U, U)   W2^T (encoder projection), resident
    bv_ref   : (2, U)   row 0 = b1 + b2 (folded), row 1 = V weight row
    ctx_ref  : (TB, U)  context vectors (out)
    attn_ref : (TB, S)  attention weights, lane-dense: S on lanes (out)
    """
    enc = enc_ref[...]                                   # (S, U)
    bias = bv_ref[0:1, :]                                # (1, U) = b1 + b2
    v_row = bv_ref[1:2, :]                               # (1, U) = V.weight row

    # Encoder projection: once per B-tile (not once per decoder state).
    enc_proj = jnp.dot(enc, w2t_ref[...],
                       preferred_element_type=jnp.float32) + bias          # (S, U)

    # Decoder projection for the whole tile in one MXU pass.
    dec_proj = jnp.dot(dec_ref[...], w1t_ref[...],
                       preferred_element_type=jnp.float32)                 # (TB, U)

    # Additive combine + tanh: (TB, S, U). V's bias is omitted: softmax is
    # shift-invariant, so it cannot change attn or ctx.
    t = jnp.tanh(dec_proj[:, None, :] + enc_proj[None, :, :])

    # Scoring: VPU multiply + lane reduce over U -> (TB, S), lane-dense in S.
    score = jnp.sum(t * v_row, axis=-1)                                    # (TB, S)

    # Softmax over the sequence (lane) axis, one row per decoder state.
    m = jnp.max(score, axis=-1, keepdims=True)
    e = jnp.exp(score - m)
    denom = jnp.sum(e, axis=-1, keepdims=True)
    attn = e * pl.reciprocal(denom, approx=True)                           # (TB, S)

    # Context: real MXU matmul (TB, S) @ (S, U) -> (TB, U).
    ctx = jnp.dot(attn, enc, preferred_element_type=jnp.float32)

    ctx_ref[...] = ctx.astype(ctx_ref.dtype)
    attn_ref[...] = attn.astype(attn_ref.dtype)


@functools.partial(jax.jit, static_argnames=("block_b",))
def bahdanau_attention_batched(encoder_inputs, decoder_hidden, params, *, block_b=128):
    """Shared encoder_inputs (S, U) against B decoder states (B, U).

    Returns (context (B, U), attention_weights (B, S)). Single pallas_call with
    the grid over B-tiles; encoder/weights stay VMEM-resident across steps.
    """
    S, U = encoder_inputs.shape
    B = decoder_hidden.shape[0]

    w1t = params["w1"].T                                     # (U, U)
    w2t = params["w2"].T                                     # (U, U)
    # Folded bias (b1 + b2) and V's weight row packed into one tiny slab.
    # params["vb"] (V's bias) is intentionally unused (softmax shift-invariance).
    bv = jnp.stack([params["b1"] + params["b2"], params["v"].reshape(U)], axis=0)

    # Tile B; pad to a sublane-friendly multiple of the tile.
    tb = min(block_b, _round_up(B, 8))
    b_pad = _round_up(B, tb)
    dec = decoder_hidden
    if b_pad != B:
        dec = jnp.pad(dec, ((0, b_pad - B), (0, 0)))

    ctx, attn = pl.pallas_call(
        bahdanau_kernel,
        out_shape=(
            jax.ShapeDtypeStruct((b_pad, U), encoder_inputs.dtype),   # context
            jax.ShapeDtypeStruct((b_pad, S), encoder_inputs.dtype),   # attention
        ),
        grid_spec=pltpu.PrefetchScalarGridSpec(
            num_scalar_prefetch=0,
            grid=(b_pad // tb,),
            in_specs=[
                pl.BlockSpec((S, U), lambda i: (0, 0)),       # enc: resident
                pl.BlockSpec((tb, U), lambda i: (i, 0)),      # dec: per B-tile
                pl.BlockSpec((U, U), lambda i: (0, 0)),       # W1^T: resident
                pl.BlockSpec((U, U), lambda i: (0, 0)),       # W2^T: resident
                pl.BlockSpec((2, U), lambda i: (0, 0)),       # [b1+b2; v]: resident
            ],
            out_specs=(
                pl.BlockSpec((tb, U), lambda i: (i, 0)),
                pl.BlockSpec((tb, S), lambda i: (i, 0)),
            ),
        ),
        compiler_params=pltpu.CompilerParams(
            dimension_semantics=("parallel",),        # shards B-tiles on v7x's 2 TCs
            vmem_limit_bytes=32 * 1024 * 1024,
        ),
    )(encoder_inputs, dec, w1t, w2t, bv)

    return ctx[:B], attn[:B]


def bahdanau_attention(encoder_inputs, decoder_hidden, params):
    """Module-faithful forward: enc (S,U), dec (1,U) -> (ctx (1,U), attn (S,1))."""
    ctx, attn = bahdanau_attention_batched(encoder_inputs, decoder_hidden, params)
    return ctx, attn.T


def init_params(key, units):
    """Deterministic init mimicking PyTorch Linear default (uniform +-1/sqrt(fan_in))."""
    ks = jax.random.split(key, 6)
    bound = 1.0 / jnp.sqrt(units)
    return {
        "w1": jax.random.uniform(ks[0], (units, units), jnp.float32, -bound, bound),
        "b1": jax.random.uniform(ks[1], (units,), jnp.float32, -bound, bound),
        "w2": jax.random.uniform(ks[2], (units, units), jnp.float32, -bound, bound),
        "b2": jax.random.uniform(ks[3], (units,), jnp.float32, -bound, bound),
        "v":  jax.random.uniform(ks[4], (1, units), jnp.float32, -bound, bound),
        "vb": jax.random.uniform(ks[5], (1,), jnp.float32, -bound, bound),
    }


def reference_single(enc, dec, p):
    """Pure-JAX reference of the exact PyTorch forward (includes V's bias)."""
    h1 = dec @ p["w1"].T + p["b1"]
    h2 = enc @ p["w2"].T + p["b2"]
    score = jnp.tanh(h1 + h2) @ p["v"].T + p["vb"]
    attn = jax.nn.softmax(score, axis=0)
    ctx = jnp.sum(attn * enc, axis=0, keepdims=True)
    return ctx, attn


if __name__ == "__main__":
    S, U, B = 8, 32, 8          # seq length, units (hidden dim), batch of decoder states
    key = jax.random.PRNGKey(0)
    k_enc, k_dec, k_par = jax.random.split(key, 3)

    encoder_inputs = jax.random.normal(k_enc, (S, U), jnp.float32)
    dec_batch = jax.random.normal(k_dec, (B, U), jnp.float32)
    params = init_params(k_par, U)

    # Batched run: B decoder states vs a shared encoder, single pallas_call.
    ctx_b, attn_b = bahdanau_attention_batched(encoder_inputs, dec_batch, params)
    jax.block_until_ready((ctx_b, attn_b))

    # Module-faithful single-query call (matches the PyTorch forward shapes).
    ctx1, attn1 = bahdanau_attention(encoder_inputs, dec_batch[:1], params)
    jax.block_until_ready((ctx1, attn1))

    # Tolerance accommodates the EUP approximate reciprocal in the softmax.
    ATOL, RTOL = 1e-3, 2e-3

    for i in range(B):
        c_ref, a_ref = reference_single(encoder_inputs, dec_batch[i:i + 1], params)
        assert jnp.allclose(ctx_b[i:i + 1], c_ref, atol=ATOL, rtol=RTOL)
        assert jnp.allclose(attn_b[i].reshape(S, 1), a_ref, atol=ATOL, rtol=RTOL)

    c_ref, a_ref = reference_single(encoder_inputs, dec_batch[:1], params)
    assert ctx1.shape == (1, U) and attn1.shape == (S, 1)
    assert jnp.allclose(ctx1, c_ref, atol=ATOL, rtol=RTOL)
    assert jnp.allclose(attn1, a_ref, atol=ATOL, rtol=RTOL)

    print("KERNEL_OK")
</pallas_src>

<mosaic_0001>
module attributes {stable_mosaic.version = 11 : i64} {
  func.func @bahdanau_kernel(%arg0: i32, %arg1: memref<8x32xf32, #tpu.memory_space<vmem>>, %arg2: memref<8x32xf32, #tpu.memory_space<vmem>>, %arg3: memref<32x32xf32, #tpu.memory_space<vmem>>, %arg4: memref<32x32xf32, #tpu.memory_space<vmem>>, %arg5: memref<2x32xf32, #tpu.memory_space<vmem>>, %arg6: memref<8x32xf32, #tpu.memory_space<vmem>>, %arg7: memref<8x8xf32, #tpu.memory_space<vmem>>) attributes {dimension_semantics = [#tpu.dimension_semantics<parallel>], iteration_bounds = array<i64: 1>, scalar_prefetch = 0 : i64, scratch_operands = 0 : i64, tpu.core_type = #tpu.core_type<tc>, window_params = [{pipeline_mode = #tpu.pipeline_mode<synchronous>, transform_indices = @transform_0, window_bounds = array<i64: 8, 32>}, {transform_indices = @transform_1, window_bounds = array<i64: 8, 32>}, {pipeline_mode = #tpu.pipeline_mode<synchronous>, transform_indices = @transform_2, window_bounds = array<i64: 32, 32>}, {pipeline_mode = #tpu.pipeline_mode<synchronous>, transform_indices = @transform_3, window_bounds = array<i64: 32, 32>}, {pipeline_mode = #tpu.pipeline_mode<synchronous>, transform_indices = @transform_4, window_bounds = array<i64: 2, 32>}, {transform_indices = @transform_5, window_bounds = array<i64: 8, 32>}, {transform_indices = @transform_6, window_bounds = array<i64: 8, 8>}]} {
    %c0 = arith.constant 0 : index
    %c0_0 = arith.constant 0 : index
    %0 = vector.load %arg1[%c0, %c0_0] : memref<8x32xf32, #tpu.memory_space<vmem>>, vector<8x32xf32>
    %c0_1 = arith.constant 0 : index
    %c0_2 = arith.constant 0 : index
    %1 = vector.load %arg5[%c0_1, %c0_2] : memref<2x32xf32, #tpu.memory_space<vmem>>, vector<1x32xf32>
    %c1 = arith.constant 1 : index
    %c0_3 = arith.constant 0 : index
    %2 = vector.load %arg5[%c1, %c0_3] : memref<2x32xf32, #tpu.memory_space<vmem>>, vector<1x32xf32>
    %c0_4 = arith.constant 0 : index
    %c0_5 = arith.constant 0 : index
    %3 = vector.load %arg4[%c0_4, %c0_5] : memref<32x32xf32, #tpu.memory_space<vmem>>, vector<32x32xf32>
    %cst = arith.constant dense<0.000000e+00> : vector<8x32xf32>
    %4 = tpu.matmul %0, %3, %cst {dimension_numbers = #tpu.dot_dimension_numbers<[1], [0], [0], [1], [0, 0, 1, 1], [], []>} : vector<8x32xf32>, vector<32x32xf32>, vector<8x32xf32> -> vector<8x32xf32>
    %5 = vector.broadcast %1 : vector<1x32xf32> to vector<8x32xf32>
    %6 = arith.addf %4, %5 : vector<8x32xf32>
    %c0_6 = arith.constant 0 : index
    %c0_7 = arith.constant 0 : index
    %7 = vector.load %arg2[%c0_6, %c0_7] : memref<8x32xf32, #tpu.memory_space<vmem>>, vector<8x32xf32>
    %c0_8 = arith.constant 0 : index
    %c0_9 = arith.constant 0 : index
    %8 = vector.load %arg3[%c0_8, %c0_9] : memref<32x32xf32, #tpu.memory_space<vmem>>, vector<32x32xf32>
    %cst_10 = arith.constant dense<0.000000e+00> : vector<8x32xf32>
    %9 = tpu.matmul %7, %8, %cst_10 {dimension_numbers = #tpu.dot_dimension_numbers<[1], [0], [0], [1], [0, 0, 1, 1], [], []>} : vector<8x32xf32>, vector<32x32xf32>, vector<8x32xf32> -> vector<8x32xf32>
    %10 = vector.shape_cast %9 : vector<8x32xf32> to vector<8x1x32xf32>
    %11 = vector.shape_cast %6 : vector<8x32xf32> to vector<1x8x32xf32>
    %12 = vector.broadcast %10 : vector<8x1x32xf32> to vector<8x8x32xf32>
    %13 = vector.broadcast %11 : vector<1x8x32xf32> to vector<8x8x32xf32>
    %14 = arith.addf %12, %13 : vector<8x8x32xf32>
    %15 = math.tanh %14 : vector<8x8x32xf32>
    %16 = vector.shape_cast %2 : vector<1x32xf32> to vector<1x1x32xf32>
    %17 = vector.broadcast %16 : vector<1x1x32xf32> to vector<8x8x32xf32>
    %18 = arith.mulf %15, %17 : vector<8x8x32xf32>
    %cst_11 = arith.constant dense<0.000000e+00> : vector<8x8xf32>
    %19 = vector.multi_reduction <add>, %18, %cst_11 [2] : vector<8x8x32xf32> to vector<8x8xf32>
    %cst_12 = arith.constant dense<0xFF800000> : vector<8xf32>
    %20 = vector.multi_reduction <maximumf>, %19, %cst_12 [1] : vector<8x8xf32> to vector<8xf32>
    %21 = vector.shape_cast %20 : vector<8xf32> to vector<8x1xf32>
    %22 = vector.broadcast %21 : vector<8x1xf32> to vector<8x8xf32>
    %23 = arith.subf %19, %22 : vector<8x8xf32>
    %24 = math.exp %23 : vector<8x8xf32>
    %cst_13 = arith.constant dense<0.000000e+00> : vector<8xf32>
    %25 = vector.multi_reduction <add>, %24, %cst_13 [1] : vector<8x8xf32> to vector<8xf32>
    %26 = vector.shape_cast %25 : vector<8xf32> to vector<8x1xf32>
    %27 = tpu.reciprocal %26 {approx = true} : vector<8x1xf32> -> vector<8x1xf32>
    %28 = vector.broadcast %27 : vector<8x1xf32> to vector<8x8xf32>
    %29 = arith.mulf %24, %28 : vector<8x8xf32>
    %cst_14 = arith.constant dense<0.000000e+00> : vector<8x32xf32>
    %30 = tpu.matmul %29, %0, %cst_14 {dimension_numbers = #tpu.dot_dimension_numbers<[1], [0], [0], [1], [0, 0, 1, 1], [], []>} : vector<8x8xf32>, vector<8x32xf32>, vector<8x32xf32> -> vector<8x32xf32>
    %c0_15 = arith.constant 0 : index
    %c0_16 = arith.constant 0 : index
    %31 = vector.load %arg6[%c0_15, %c0_16] : memref<8x32xf32, #tpu.memory_space<vmem>>, vector<8x32xf32>
    tpu.vector_store %arg6[%c0_15, %c0_16], %30 {strides = array<i32>} : memref<8x32xf32, #tpu.memory_space<vmem>>, vector<8x32xf32>,
    %c0_17 = arith.constant 0 : index
    %c0_18 = arith.constant 0 : index
    %32 = vector.load %arg7[%c0_17, %c0_18] : memref<8x8xf32, #tpu.memory_space<vmem>>, vector<8x8xf32>
    tpu.vector_store %arg7[%c0_17, %c0_18], %29 {strides = array<i32>} : memref<8x8xf32, #tpu.memory_space<vmem>>, vector<8x8xf32>,
    return
  }
  func.func @transform_0(%arg0: i32) -> (i32, i32) {
    %c0_i32 = arith.constant 0 : i32
    %c0_i32_0 = arith.constant 0 : i32
    %c0_i32_1 = arith.constant 0 : i32
    return %c0_i32, %c0_i32_0 : i32, i32
  }
  func.func @transform_1(%arg0: i32) -> (i32, i32) {
    %c0_i32 = arith.constant 0 : i32
    %c0_i32_0 = arith.constant 0 : i32
    return %arg0, %c0_i32 : i32, i32
  }
  func.func @transform_2(%arg0: i32) -> (i32, i32) {
    %c0_i32 = arith.constant 0 : i32
    %c0_i32_0 = arith.constant 0 : i32
    %c0_i32_1 = arith.constant 0 : i32
    return %c0_i32, %c0_i32_0 : i32, i32
  }
  func.func @transform_3(%arg0: i32) -> (i32, i32) {
    %c0_i32 = arith.constant 0 : i32
    %c0_i32_0 = arith.constant 0 : i32
    %c0_i32_1 = arith.constant 0 : i32
    return %c0_i32, %c0_i32_0 : i32, i32
  }
  func.func @transform_4(%arg0: i32) -> (i32, i32) {
    %c0_i32 = arith.constant 0 : i32
    %c0_i32_0 = arith.constant 0 : i32
    %c0_i32_1 = arith.constant 0 : i32
    return %c0_i32, %c0_i32_0 : i32, i32
  }
  func.func @transform_5(%arg0: i32) -> (i32, i32) {
    %c0_i32 = arith.constant 0 : i32
    %c0_i32_0 = arith.constant 0 : i32
    return %arg0, %c0_i32 : i32, i32
  }
  func.func @transform_6(%arg0: i32) -> (i32, i32) {
    %c0_i32 = arith.constant 0 : i32
    %c0_i32_0 = arith.constant 0 : i32
    return %arg0, %c0_i32 : i32, i32
  }
}

</mosaic_0001>

<bundles_post_ra>
// kernel: bahdanau_attention_batched.1
= control target key start
LH: loop header
LB: loop body
LE: loop exit
PB: predicated region body
PF: predicated region fallthrough
CT: control target
= control target key end

     0   :  { %12 = vsyncpa [#allocation3], 0  ;;  %v884_v2 = vmov 0.0   ;;  %s1086_s0 = inlined_call_operand.vmem [shape: f32[8,32], index: 0, kind: input, shape index: {}]   ;;  %s1087_s1 = inlined_call_operand.vmem [shape: f32[8,32], index: 1, kind: input, shape index: {}]   ;;  %s1088_s2 = inlined_call_operand.vmem [shape: f32[32,32], index: 2, kind: input, shape index: {}]   ;;  %s1089_s3 = inlined_call_operand.vmem [shape: f32[32,32], index: 3, kind: input, shape index: {}]   ;;  %s1090_s4 = inlined_call_operand.vmem [shape: f32[2,32], index: 4, kind: input, shape index: {}]   ;;  %s1091_s5 = inlined_call_operand.hbm [shape: f32[8,32], index: 5, kind: output, shape index: {0}]   ;;  %s1092_s6 = inlined_call_operand.hbm [shape: f32[8,8], index: 6, kind: output, shape index: {1}]  }
   0x1   :  { %v113_v0 = vld [vmem:[%s1088_s2 + $0x18] sm:$0xff]  ;;  %782 = vmatprep.subr.mxu1 %v884_v2  ;;  %771 = vmatprep.subr.mxu0 %v884_v2  ;;  %v112_v3 = vld [vmem:[%s1088_s2 + $0x10] sm:$0xff]  ;;  %v111_v5 = vld [vmem:[%s1088_s2 + $0x8] sm:$0xff] }
   0x2   :  { %v30_v1 = vld [vmem:[%s1089_s3 + $0x18] sm:$0xff]  ;;  %v29_v4 = vld [vmem:[%s1089_s3 + $0x10] sm:$0xff]  ;;  %783 = vmatpush3.msra.mxu1 %v113_v0 }
   0x3   :  { %772 = vmatpush3.msra.mxu0 %v30_v1  ;;  %784 = vmatprep.subr.mxu1 %v884_v2 }
   0x4   :  { %773 = vmatprep.subr.mxu0 %v884_v2 }
   0x5   :  { %13 = vsyncpa [#allocation5], 0  ;;  %785 = vmatpush3.msra.mxu1 %v112_v3  ;;  %774 = vmatpush3.msra.mxu0 %v29_v4  ;;  %v28_v6 = vld [vmem:[%s1089_s3 + $0x8] sm:$0xff]  ;;  %v110_v7 = vld [vmem:[%s1088_s2] sm:$0xff]  ;;  %vm885_vm0 = vmmov 0   ;;  %vm35_vm1 = vcmask 261120   ;;  %v192_v13 = vlaneseq }
   0x6   :  { %786 = vmatprep.subr.mxu1 %v884_v2  ;;  %775 = vmatprep.subr.mxu0 %v884_v2  ;;  %v109_v8 = vld [vmem:[%s1087_s1] sm:$0xff]  ;;  %v886_v11 = vmov 1966171168   ;;  %vm371_vm2 = vcmask 1041409   ;;  %vm373_vm3 = vcmask 1042434   ;;  %vm375_vm4 = vcmask 1043459  }
   0x7   :  { %787 = vmatpush3.msra.mxu1 %v111_v5  ;;  %790 = vmatprep.mubr.msk.f32.mxu1 %vm885_vm0, %v884_v2  ;;  %v27_v9 = vld [vmem:[%s1089_s3] sm:$0xff]  ;;  %v190_v12 = vunpack.c.l.s4 %v886_v11  ;;  %v961_v15 = vshrl.u32 %v192_v13, 7  ;;  %vm377_vm5 = vcmask 1044484   ;;  %vm379_vm6 = vcmask 1045509  }
   0x8   :  { %788 = vmatprep.subr.mxu1 %v884_v2  ;;  %776 = vmatpush3.msra.mxu0 %v28_v6  ;;  %v24_v10 = vld [vmem:[%s1086_s0] sm:$0xff]  ;;  %vm381_vm7 = vcmask 1046534   ;;  %vm383_vm8 = vcmask 1047559   ;;  %vm386_vm9 = vcmask 64512  }
   0x9   :  { %789 = vmatpush3.msra.mxu1 %v110_v7  ;;  %777 = vmatprep.subr.mxu0 %v884_v2  ;;  %v191_v14 = vunpack.c.0.s8 %v190_v12  ;;  %v754_v20 = vld [vmem:[%s1090_s4] ss:$0 sm:$0xff]  ;;  %v968_v21 = vsub.s32 0, %v961_v15  ;;  %v757_v53 = vld [vmem:[%s1090_s4 + $0x1] ss:$0 sm:$0xff]  ;;  %s888_s4 = smov [#allocation4]  }
   0xa   :  { %791 = vmatmul.mubr.msk.f32.vlgmr.msra.gmra.mxu1 %vm35_vm1, %v109_v8  ;;  %778 = vmatpush3.msra.mxu0 %v27_v9  ;;  %s742_s17 = sshll.u32 %s888_s4, 4  ;;  %s743_s17 = int_to_ptr.vmem [resolvable:$true] %s742_s17 }
   0xb   :  { %779 = vmatprep.mubr.msk.f32.mxu0 %vm885_vm0, %v884_v2  ;;  %793 = vmatprep.subr.mxu0 %v884_v2  ;;  %v194_v16 = vsub.s32 %v191_v14, %v961_v15  ;;  %s840_s18 = scalar_lea.vmem %s743_s17, 128  ;;  %p845_p1 = scmp.lt.s32.totalorder %s743_s17, %s743_s17 }
   0xc   :  { %780 = vmatmul.mubr.msk.f32.vlgmr.msra.gmra.mxu0 %vm35_vm1, %v24_v10  ;;  %p841_p0 = scmp.ne.s32.totalorder %s743_s17, %s840_s18  ;;  %p846_p2 = scmp.lt.s32.totalorder %s840_s18, %s840_s18 }
   0xd   :  { %794 = vmatpush3.msra.mxu0 %v24_v10  ;;  %795 = vmatprep.mubr.msk.f32.mxu0 %vm885_vm0, %v884_v2 }
   0xe   :  { %p847_p3 = por %p846_p2, %p845_p1 }
  0x10   :  { %p848_p4 = pnand %p847_p3, %p841_p0 }
  0xca   :  { %v183_v17 = vpop.f32.mrf.mxu1 }
  0xcb   :  { %v188_v18 = vcombine.high %v183_v17, %v183_v17  ;;  %v195_v19 = vrot.slane %v183_v17, %v194_v16 }
  0xcc   :  { %v792_v22 = vpop.f32.mrf.mxu1  ;;  %v105_v23 = vpop.f32.mrf.mxu0 }
  0xcd   :  { %v202_v24 = vrot.slane %v188_v18, %v194_v16  ;;  %v203_v25 = vcombine.high %v195_v19, %v195_v19  ;;  %v211_v26 = vrot.slane %v195_v19, %v194_v16  ;;  %v106_v27 = vadd.f32 %v754_v20, %v105_v23 }
  0xce   :  { %v781_v28 = vpop.f32.mrf.mxu0 }
  0xcf   :  { %v204_v29 = vcombine.high %v202_v24, %v202_v24  ;;  %v218_v30 = vrot.slane %v202_v24, %v194_v16  ;;  %v225_v31 = vrot.slane %v203_v25, %v194_v16  ;;  %v233_v32 = vcombine.high %v211_v26, %v211_v26 }
  0xd0   :  { %v240_v33 = vrot.slane %v211_v26, %v968_v21 }
  0xd1   :  { %v232_v34 = vrot.slane %v204_v29, %v194_v16  ;;  %v234_v35 = vcombine.high %v218_v30, %v218_v30  ;;  %v235_v36 = vcombine.high %v225_v31, %v225_v31  ;;  %v244_v37 = vrot.slane %v225_v31, %v968_v21 }
  0xd2   :  { %v248_v38 = vrot.slane %v233_v32, %v968_v21  ;;  %v256_v39 = vrot.slane %v218_v30, %v968_v21  ;;  %v277_v40 = vadd.f32 %v240_v33, %v106_v27  ;;  %v338_v16 = vand.u32 127, %v192_v13 }
  0xd3   :  { %v236_v41 = vcombine.high %v232_v34, %v232_v34  ;;  %v252_v42 = vrot.slane %v235_v36, %v968_v21  ;;  %v260_v43 = vrot.slane %v232_v34, %v968_v21  ;;  %v264_v44 = vrot.slane %v234_v35, %v968_v21 }
  0xd4   :  { %806 = vtanh.f32 %v277_v40  ;;  %v279_v45 = vadd.f32 %v248_v38, %v106_v27  ;;  %v278_v46 = vadd.f32 %v244_v37, %v106_v27  ;;  %v281_v48 = vadd.f32 %v256_v39, %v106_v27 }
  0xd5   :  { %v280_v47 = vadd.f32 %v252_v42, %v106_v27  ;;  %v268_v49 = vrot.slane %v236_v41, %v968_v21  ;;  %v282_v50 = vadd.f32 %v260_v43, %v106_v27  ;;  %v283_v51 = vadd.f32 %v264_v44, %v106_v27 }
  0xd6   :  { %808 = vtanh.f32 %v279_v45  ;;  %v991_v18 = vsub.s32 %v338_v16, %v961_v15  ;;  %v887_v42 = vmov 0   ;;  %v397_v43 = vsub.s32 1, %v961_v15 }
  0xd7   :  { %810 = vtanh.f32 %v278_v46  ;;  %v284_v52 = vadd.f32 %v268_v49, %v106_v27  ;;  %805 = vset.pattern.permute.xlu0 %v887_v42  ;;  %804 = vset.pattern.permute.xlu1 %v887_v42  ;;  %v401_v44 = vsub.s32 2, %v961_v15  ;;  %v405_v45 = vsub.s32 3, %v961_v15 }
  0xd8   :  { %812 = vtanh.f32 %v280_v47 }
  0xd9   :  { %814 = vtanh.f32 %v281_v48 }
  0xda   :  { %816 = vtanh.f32 %v282_v50  ;;  %v409_v50 = vsub.s32 4, %v961_v15 }
  0xdb   :  { %818 = vtanh.f32 %v283_v51 }
  0xdc   :  { %820 = vtanh.f32 %v284_v52 }
  0xe1   :  { %v807_v54 = vpop.eup %806 }
  0xe2   :  { %v297_v55 = vmul.f32 %v807_v54, %v757_v53 }
  0xe3   :  { %v809_v56 = vpop.eup %808 }
  0xe4   :  { %v811_v57 = vpop.eup %810  ;;  %v305_v58 = vsel %vm35_vm1, %v297_v55, 0.0  ;;  %v299_v59 = vmul.f32 %v809_v56, %v757_v53 }
  0xe5   :  { %v813_v60 = vpop.eup %812  ;;  %306 = vadd.xlane.f32.xlu0 %v305_v58  ;;  %v298_v61 = vmul.f32 %v811_v57, %v757_v53  ;;  %v413_v57 = vsub.s32 5, %v961_v15 }
  0xe6   :  { %v815_v62 = vpop.eup %814  ;;  %v311_v63 = vsel %vm35_vm1, %v299_v59, 0.0  ;;  %v300_v0 = vmul.f32 %v813_v60, %v757_v53 }
  0xe7   :  { %v817_v1 = vpop.eup %816  ;;  %312 = vadd.xlane.f32.xlu1 %v311_v63  ;;  %v308_v2 = vsel %vm35_vm1, %v298_v61, 0.0  ;;  %v301_v3 = vmul.f32 %v815_v62, %v757_v53  ;;  %v417_v61 = vsub.s32 6, %v961_v15 }
  0xe8   :  { %v819_v4 = vpop.eup %818  ;;  %v314_v5 = vsel %vm35_vm1, %v300_v0, 0.0  ;;  %v302_v6 = vmul.f32 %v817_v1, %v757_v53  ;;  %v421_v1 = vsub.s32 7, %v961_v15 }
  0xe9   :  { %309 = vadd.xlane.f32.xlu0 %v308_v2  ;;  %v821_v7 = vpop.eup %820  ;;  %v317_v8 = vsel %vm35_vm1, %v301_v3, 0.0  ;;  %v303_v9 = vmul.f32 %v819_v4, %v757_v53 }
  0xea   :  { %v320_v10 = vsel %vm35_vm1, %v302_v6, 0.0  ;;  %v304_v11 = vmul.f32 %v821_v7, %v757_v53 }
  0xeb   :  { %315 = vadd.xlane.f32.xlu1 %v314_v5  ;;  %v323_v12 = vsel %vm35_vm1, %v303_v9, 0.0 }
  0xec   :  { %v326_v14 = vsel %vm35_vm1, %v304_v11, 0.0 }
  0xed   :  { %318 = vadd.xlane.f32.xlu0 %v317_v8 }
  0xef   :  { %321 = vadd.xlane.f32.xlu1 %v320_v10 }
  0xf1   :  { %324 = vadd.xlane.f32.xlu0 %v323_v12 }
  0xf3   :  { %327 = vadd.xlane.f32.xlu1 %v326_v14 }
 0x16e   :  { %v307_v17 = vpop.xlane.xlu0 %306 }
 0x16f   :  { %v342_v22 = vrot.slane %v307_v17, %v991_v18 }
 0x170   :  { %v313_v19 = vpop.xlane.xlu1 %312 }
 0x171   :  { %v350_v24 = vrot.slane %v313_v19, %v991_v18 }
 0x172   :  { %v310_v20 = vpop.xlane.xlu0 %309 }
 0x173   :  { %v346_v23 = vrot.slane %v310_v20, %v991_v18 }
 0x174   :  { %v316_v25 = vpop.xlane.xlu1 %315 }
 0x175   :  { %v372_v26 = vsel %vm371_vm2, %v346_v23, %v342_v22  ;;  %v354_v13 = vrot.slane %v316_v25, %v991_v18 }
 0x176   :  { %v374_v27 = vsel %vm373_vm3, %v350_v24, %v372_v26  ;;  %v319_v28 = vpop.xlane.xlu0 %318 }
 0x177   :  { %v376_v29 = vsel %vm375_vm4, %v354_v13, %v374_v27  ;;  %v358_v30 = vrot.slane %v319_v28, %v991_v18 }
 0x178   :  { %v322_v31 = vpop.xlane.xlu1 %321 }
 0x179   :  { %v378_v32 = vsel %vm377_vm5, %v358_v30, %v376_v29  ;;  %v362_v33 = vrot.slane %v322_v31, %v991_v18 }
 0x17a   :  { %v325_v34 = vpop.xlane.xlu0 %324 }
 0x17b   :  { %v366_v35 = vrot.slane %v325_v34, %v991_v18  ;;  %v380_v36 = vsel %vm379_vm6, %v362_v33, %v378_v32 }
 0x17c   :  { %v328_v37 = vpop.xlane.xlu1 %327 }
 0x17d   :  { %v370_v38 = vrot.slane %v328_v37, %v991_v18  ;;  %v382_v39 = vsel %vm381_vm7, %v366_v35, %v380_v36 }
 0x17f   :  { %v384_v40 = vsel %vm383_vm8, %v370_v38, %v382_v39 }
 0x180   :  { %v387_v41 = vsel %vm386_vm9, %v384_v40, -inf }
 0x181   :  { %388 = vmax.xlane.f32.xlu0 %v387_v41 }
 0x20a   :  { %v389_v46 = vpop.xlane.xlu0 %388 }
 0x20b   :  { %v394_v47 = vrot.slane %v389_v46, %v968_v21  ;;  %v398_v48 = vrot.slane %v389_v46, %v397_v43  ;;  %v402_v49 = vrot.slane %v389_v46, %v401_v44  ;;  %v406_v51 = vrot.slane %v389_v46, %v405_v45 }
 0x20c   :  { %v410_v58 = vrot.slane %v389_v46, %v409_v50  ;;  %v414_v62 = vrot.slane %v389_v46, %v413_v57  ;;  %v418_v2 = vrot.slane %v389_v46, %v417_v61  ;;  %v422_v5 = vrot.slane %v389_v46, %v421_v1 }
 0x20d   :  { %v431_v52 = vsub.f32 %v307_v17, %v394_v47  ;;  %v432_v53 = vsub.f32 %v310_v20, %v398_v48  ;;  %v433_v54 = vsub.f32 %v313_v19, %v402_v49  ;;  %v434_v59 = vsub.f32 %v316_v25, %v406_v51 }
 0x20e   :  { %v435_v63 = vsub.f32 %v319_v28, %v410_v58  ;;  %v436_v3 = vsub.f32 %v322_v31, %v414_v62  ;;  %v437_v6 = vsub.f32 %v325_v34, %v418_v2  ;;  %v438_v10 = vsub.f32 %v328_v37, %v422_v5 }
 0x20f   :  { %v439_v55 = vmul.f32 1.442695, %v431_v52  ;;  %v441_v56 = vmul.f32 1.442695, %v432_v53  ;;  %v443_v60 = vmul.f32 1.442695, %v433_v54 }
 0x210   :  { %v445_v0 = vmul.f32 1.442695, %v434_v59  ;;  %v447_v4 = vmul.f32 1.442695, %v435_v63  ;;  %v449_v7 = vmul.f32 1.442695, %v436_v3 }
 0x211   :  { %822 = vpow2.f32 %v439_v55  ;;  %v451_v11 = vmul.f32 1.442695, %v437_v6  ;;  %v453_v14 = vmul.f32 1.442695, %v438_v10 }
 0x212   :  { %824 = vpow2.f32 %v441_v56 }
 0x213   :  { %826 = vpow2.f32 %v443_v60 }
 0x214   :  { %828 = vpow2.f32 %v445_v0 }
 0x215   :  { %830 = vpow2.f32 %v447_v4 }
 0x216   :  { %832 = vpow2.f32 %v449_v7 }
 0x217   :  { %834 = vpow2.f32 %v451_v11 }
 0x218   :  { %836 = vpow2.f32 %v453_v14 }
 0x21e   :  { %v823_v8 = vpop.eup %822 }
 0x21f   :  { %v825_v9 = vpop.eup %824  ;;  %464 = vperm.xlu1 %804, %v823_v8  }
 0x220   :  { %467 = vperm.xlu0 %805, %v825_v9   ;;  %v827_v12 = vpop.eup %826 }
 0x221   :  { %v829_v16 = vpop.eup %828 }
 0x222   :  { %v831_v17 = vpop.eup %830 }
 0x223   :  { %470 = vperm.xlu1 %804, %v827_v12   ;;  %v833_v19 = vpop.eup %832 }
 0x224   :  { %v835_v20 = vpop.eup %834 }
 0x225   :  { %v837_v22 = vpop.eup %836 }
 0x227   :  { %473 = vperm.xlu1 %804, %v829_v16  }
 0x22b   :  { %476 = vperm.xlu1 %804, %v831_v17  }
 0x22f   :  { %479 = vperm.xlu1 %804, %v833_v19  }
 0x233   :  { %482 = vperm.xlu1 %804, %v835_v20  }
 0x237   :  { %485 = vperm.xlu1 %804, %v837_v22  }
 0x29a   :  { %v465_v23 = vpop.permute.xlu1 %464 }
 0x29b   :  { %v468_v13 = vpop.permute.xlu0 %467  ;;  %v490_v29 = vrot.slane %v465_v23, %v991_v18 }
 0x29c   :  { %v494_v28 = vrot.slane %v468_v13, %v991_v18 }
 0x29e   :  { %v471_v24 = vpop.permute.xlu1 %470  ;;  %v519_v34 = vsel %vm371_vm2, %v494_v28, %v490_v29 }
 0x29f   :  { %v498_v30 = vrot.slane %v471_v24, %v991_v18 }
 0x2a1   :  { %v520_v36 = vsel %vm373_vm3, %v498_v30, %v519_v34 }
 0x2a2   :  { %v474_v25 = vpop.permute.xlu1 %473 }
 0x2a3   :  { %v502_v31 = vrot.slane %v474_v25, %v991_v18 }
 0x2a5   :  { %v521_v38 = vsel %vm375_vm4, %v502_v31, %v520_v36 }
 0x2a6   :  { %v477_v26 = vpop.permute.xlu1 %476 }
 0x2a7   :  { %v506_v32 = vrot.slane %v477_v26, %v991_v18 }
 0x2a9   :  { %v522_v39 = vsel %vm377_vm5, %v506_v32, %v521_v38 }
 0x2aa   :  { %v480_v27 = vpop.permute.xlu1 %479 }
 0x2ab   :  { %v510_v35 = vrot.slane %v480_v27, %v991_v18 }
 0x2ad   :  { %v523_v41 = vsel %vm379_vm6, %v510_v35, %v522_v39 }
 0x2ae   :  { %v483_v33 = vpop.permute.xlu1 %482 }
 0x2af   :  { %v514_v37 = vrot.slane %v483_v33, %v991_v18 }
 0x2b1   :  { %v524_v46 = vsel %vm381_vm7, %v514_v37, %v523_v41 }
 0x2b2   :  { %v486_v40 = vpop.permute.xlu1 %485 }
 0x2b3   :  { %v518_v42 = vrot.slane %v486_v40, %v991_v18 }
 0x2b5   :  { %v525_v47 = vsel %vm383_vm8, %v518_v42, %v524_v46 }
 0x2b6   :  { %v527_v48 = vsel %vm386_vm9, %v525_v47, 0.0 }
 0x2b7   :  { %528 = vadd.xlane.f32.xlu1 %v527_v48 }
 0x340   :  { %v529_v49 = vpop.xlane.xlu1 %528 }
 0x341   :  { %838 = vrcp.f32 %v529_v49 }
 0x34e   :  { %v839_v51 = vpop.eup %838 }
 0x34f   :  { %v535_v52 = vrot.slane %v839_v51, %v968_v21  ;;  %v539_v54 = vrot.slane %v839_v51, %v397_v43  ;;  %v543_v56 = vrot.slane %v839_v51, %v401_v44  ;;  %v547_v59 = vrot.slane %v839_v51, %v405_v45 }
 0x350   :  { %v551_v62 = vrot.slane %v839_v51, %v409_v50  ;;  %v555_v43 = vrot.slane %v839_v51, %v413_v57  ;;  %v559_v44 = vrot.slane %v839_v51, %v417_v61  ;;  %v563_v45 = vrot.slane %v839_v51, %v421_v1 }
 0x351   :  { %v572_v53 = vmul.f32 %v823_v8, %v535_v52  ;;  %v573_v55 = vmul.f32 %v825_v9, %v539_v54  ;;  %v574_v58 = vmul.f32 %v827_v12, %v543_v56  ;;  %v575_v60 = vmul.f32 %v829_v16, %v547_v59 }
 0x352   :  { %v576_v21 = vmul.f32 %v831_v17, %v551_v62  ;;  %v577_v63 = vmul.f32 %v833_v19, %v555_v43  ;;  %v578_v0 = vmul.f32 %v835_v20, %v559_v44  ;;  %v579_v2 = vmul.f32 %v837_v22, %v563_v45 }
 0x353   :  { %589 = vperm.xlu0 %805, %v572_v53  }
 0x357   :  { %592 = vperm.xlu0 %805, %v573_v55  }
 0x35b   :  { %595 = vperm.xlu0 %805, %v574_v58  }
 0x35f   :  { %598 = vperm.xlu0 %805, %v575_v60  }
 0x363   :  { %601 = vperm.xlu0 %805, %v576_v21  }
 0x367   :  { %604 = vperm.xlu0 %805, %v577_v63  }
 0x36b   :  { %607 = vperm.xlu0 %805, %v578_v0  }
 0x36f   :  { %610 = vperm.xlu0 %805, %v579_v2  }
 0x3ce   :  { %v590_v3 = vpop.permute.xlu0 %589 }
 0x3cf   :  { %v615_v61 = vrot.slane %v590_v3, %v991_v18 }
 0x3d2   :  { %v593_v50 = vpop.permute.xlu0 %592 }
 0x3d3   :  { %v619_v57 = vrot.slane %v593_v50, %v991_v18 }
 0x3d5   :  { %v644_v10 = vsel %vm371_vm2, %v619_v57, %v615_v61 }
 0x3d6   :  { %v596_v4 = vpop.permute.xlu0 %595 }
 0x3d7   :  { %v623_v8 = vrot.slane %v596_v4, %v991_v18 }
 0x3d9   :  { %v645_v12 = vsel %vm373_vm3, %v623_v8, %v644_v10 }
 0x3da   :  { %v599_v5 = vpop.permute.xlu0 %598 }
 0x3db   :  { %v627_v9 = vrot.slane %v599_v5, %v991_v18 }
 0x3dd   :  { %v646_v16 = vsel %vm375_vm4, %v627_v9, %v645_v12 }
 0x3de   :  { %v602_v6 = vpop.permute.xlu0 %601 }
 0x3df   :  { %v631_v15 = vrot.slane %v602_v6, %v991_v18 }
 0x3e1   :  { %v647_v17 = vsel %vm377_vm5, %v631_v15, %v646_v16 }
 0x3e2   :  { %v605_v7 = vpop.permute.xlu0 %604 }
 0x3e3   :  { %v635_v11 = vrot.slane %v605_v7, %v991_v18 }
 0x3e5   :  { %v648_v20 = vsel %vm379_vm6, %v635_v11, %v647_v17 }
 0x3e6   :  { %v608_v1 = vpop.permute.xlu0 %607 }
 0x3e7   :  { %v639_v14 = vrot.slane %v608_v1, %v991_v18 }
 0x3e9   :  { %v649_v23 = vsel %vm381_vm7, %v639_v14, %v648_v20 }
 0x3ea   :  { %v611_v19 = vpop.permute.xlu0 %610 }
 0x3eb   :  { %v643_v22 = vrot.slane %v611_v19, %v991_v18 }
 0x3ed   :  { %v650_v24 = vsel %vm383_vm8, %v643_v22, %v649_v23 }
 0x3ee   :  { %725 = vst.msk [vmem:[#allocation4] sm:$0xff] %vm386_vm9, %v650_v24  ;;  %796 = vmatmul.mubr.msk.f32.vlgmr.msra.gmra.mxu0 %vm386_vm9, %v650_v24 }
 0x3ef   :  { %851 = shalt.err (!%p848_p4)
}
 0x3f0   :  { %745 = dma.vmem_to_hbm [thread:$0]  %s743_s17, 128, %s1092_s6, [#allocation5]  }
 0x3f1   :  { %s889_s21 = smov [#allocation2]  }
 0x3f2   :  { %s732_s22 = sshll.u32 %s889_s21, 4  ;;  %s733_s22 = int_to_ptr.vmem [resolvable:$true] %s732_s22 }
 0x3f3   :  { %s860_s23 = scalar_lea.vmem %s733_s22, 128  ;;  %p865_p6 = scmp.lt.s32.totalorder %s733_s22, %s733_s22 }
 0x3f4   :  { %p861_p5 = scmp.ne.s32.totalorder %s733_s22, %s860_s23  ;;  %p866_p7 = scmp.lt.s32.totalorder %s860_s23, %s860_s23 }
 0x3f6   :  { %p867_p8 = por %p866_p7, %p865_p6 }
 0x3f8   :  { %p868_p9 = pnand %p867_p8, %p861_p5 }
 0x4ae   :  { %v719_v18 = vpop.f32.mrf.mxu0 }
 0x4af   :  { %723 = vst.msk [vmem:[#allocation2] sm:$0xff] %vm35_vm1, %v719_v18 }
 0x4b0   :  { %v797_v25 = vpop.f32.mrf.mxu0 }
 0x4b1   :  { %871 = shalt.err (!%p868_p9)
}
 0x4b2   :  { %735 = dma.vmem_to_hbm [thread:$0]  %s733_s22, 128, %s1091_s5, [#allocation3]  }
 0x4b3   :  { %880 = dma.done.wait [#allocation3], 128  }
 0x4b4   :  { %881 = vsyncadd [#allocation3], 4294967168 }
 0x4b5   :  { %882 = dma.done.wait [#allocation5], 128  }
 0x4b6   :  { %883 = vsyncadd [#allocation5], 4294967168 }
 0x4b7   :  { %752 = vsyncpa [#allocation3], 1 }
 0x4b8   :  { %753 = vsyncpa [#allocation5], 1 }

</bundles_post_ra>
